<compile_context>
chip_gen: v5e
topology: v5e:2x2
jax: 0.10.0
libtpu: 0.0.40
codegen_flags: <defaults>
</compile_context>

<pallas_src>
import jax
import jax.numpy as jnp
from jax.experimental import pallas as pl
from jax.experimental.pallas import tpu as pltpu


def attention_kernel(x_ref, w_ref, b_ref, o_ref):
    """One batch tile.

    x_ref : (TB, S, F)  input dtype (streamed per grid step)
    w_ref : (1, F)      f32, resident across grid steps
    b_ref : (1, S)      f32, resident across grid steps
    o_ref : (TB, F)     input dtype
    """
    x = x_ref[...]                                      # (TB, S, F) native dtype
    w = w_ref[...].astype(x.dtype)                      # (1, F)

    # eij = x . w  (contract F, the lane axis).  Multiply in the input dtype,
    # accumulate in f32 -> only the small (TB, S) score path is f32.
    e = jnp.sum(x * w, axis=-1, dtype=jnp.float32)      # (TB, S)
    e = jnp.tanh(e + b_ref[...])                        # bias over step dim

    a = jnp.exp(e)                                      # (TB, S)
    denom = jnp.sum(a, axis=-1, keepdims=True)          # (TB, 1)
    # One reciprocal per row, then multiply; +1e-10 is added *after* the
    # normalization, exactly as in the PyTorch module.
    a = a * pl.reciprocal(denom, approx=False) + 1e-10

    # Weighted sum over the step axis (sublane reduce), f32 accumulation:
    #   out[b, f] = sum_s a[b, s] * x[b, s, f]
    out = jnp.sum(x * a[:, :, None].astype(x.dtype), axis=1, dtype=jnp.float32)
    o_ref[...] = out.astype(o_ref.dtype)                # (TB, F)


def attention_forward(x, weight, bias, *, block_batch_bytes=8 << 20):
    """x: (B, S, F), weight: (F, 1), bias: (S,) -> (B, F)."""
    B, S, F = x.shape
    itemsize = x.dtype.itemsize

    # Batch tile: biggest tile within the per-block byte budget.  Once we
    # actually tile B, the output block (tb, F) needs an 8-aligned sublane dim.
    rows = max(1, int(block_batch_bytes) // (S * F * itemsize))
    if rows >= B:
        tb = B
    else:
        tb = min(max(8, (rows // 8) * 8), B)
    grid = (pl.cdiv(B, tb),)

    # Tiny parameters: lane-major 2-D blocks, resident across the grid.
    w2 = weight.reshape(1, F).astype(jnp.float32)       # (1, F)
    b2 = bias.reshape(1, S).astype(jnp.float32)         # (1, S)

    # Advisory cost: ~2 flops/elem for scores + ~2 for the weighted sum;
    # tanh + exp per score; dominated by reading x once and writing out once.
    cost = pl.CostEstimate(
        flops=4 * B * S * F,
        transcendentals=2 * B * S,
        bytes_accessed=B * S * F * itemsize + B * F * itemsize + F * 4 + S * 4,
    )

    # VMEM: double-buffered x tile + ~2 tile-sized elementwise temporaries +
    # double-buffered output + headroom; keep well under v7x's 64 MiB.
    tile_in = tb * S * F * itemsize
    tile_out = tb * F * itemsize
    vmem_needed = 4 * tile_in + 2 * tile_out + (2 << 20)
    vmem_limit = int(min(max(vmem_needed + vmem_needed // 4, 32 << 20), 56 << 20))

    return pl.pallas_call(
        attention_kernel,
        out_shape=jax.ShapeDtypeStruct((B, F), x.dtype),
        grid=grid,
        in_specs=[
            pl.BlockSpec((tb, S, F), lambda i: (i, 0, 0)),   # streamed x
            pl.BlockSpec((1, F), lambda i: (0, 0)),          # resident weight
            pl.BlockSpec((1, S), lambda i: (0, 0)),          # resident bias
        ],
        out_specs=pl.BlockSpec((tb, F), lambda i: (i, 0)),
        compiler_params=pltpu.CompilerParams(
            dimension_semantics=("parallel",),
            vmem_limit_bytes=vmem_limit,
        ),
        cost_estimate=cost,
    )(x, w2, b2)


def attention_reference(x, weight, bias):
    """Pure-JAX reference, exact f32 elementwise math (mirrors PyTorch)."""
    e = jnp.sum(x * weight[:, 0][None, None, :], axis=-1) + bias[None, :]
    e = jnp.tanh(e)
    a = jnp.exp(e)
    a = a / jnp.sum(a, axis=1, keepdims=True) + 1e-10
    return jnp.sum(x * a[:, :, None], axis=1)


if __name__ == "__main__":
    # TODO(synk): the optional `mask` argument of the PyTorch forward is not
    # implemented (mask=None path only).
    step_dim, feature_dim = 8, 32
    key = jax.random.PRNGKey(0)
    kx, kw, kx2 = jax.random.split(key, 3)

    # Deterministic params: xavier_uniform_-style weight (F, 1), zero bias (S,).
    bound = (6.0 / (feature_dim + 1)) ** 0.5
    weight = jax.random.uniform(kw, (feature_dim, 1), jnp.float32,
                                minval=-bound, maxval=bound)
    bias = jnp.zeros((step_dim,), jnp.float32)

    # Case 1: small batch, single tile (block covers the full array).
    batch = 2
    x = jax.random.normal(kx, (batch, step_dim, feature_dim), jnp.float32)
    out = jax.block_until_ready(attention_forward(x, weight, bias))
    ref = attention_reference(x, weight, bias)
    assert out.shape == (batch, feature_dim)
    assert jnp.allclose(out, ref, atol=2e-5, rtol=2e-5), "mismatch vs reference (case 1)"

    # Case 2: larger batch with a tiny block budget to exercise the multi-step
    # pipelined grid (tb=8, grid=(3,)).
    batch2 = 24
    x2 = jax.random.normal(kx2, (batch2, step_dim, feature_dim), jnp.float32)
    out2 = jax.block_until_ready(
        attention_forward(x2, weight, bias, block_batch_bytes=8 * 1024))
    ref2 = attention_reference(x2, weight, bias)
    assert out2.shape == (batch2, feature_dim)
    assert jnp.allclose(out2, ref2, atol=2e-5, rtol=2e-5), "mismatch vs reference (case 2)"

    print("KERNEL_OK")
</pallas_src>

<mosaic_0001>
module attributes {stable_mosaic.version = 11 : i64} {
  func.func @attention_kernel(%arg0: i32, %arg1: memref<2x8x32xf32, #tpu.memory_space<vmem>>, %arg2: memref<1x32xf32, #tpu.memory_space<vmem>>, %arg3: memref<1x8xf32, #tpu.memory_space<vmem>>, %arg4: memref<2x32xf32, #tpu.memory_space<vmem>>) attributes {dimension_semantics = [#tpu.dimension_semantics<parallel>], iteration_bounds = array<i64: 1>, scalar_prefetch = 0 : i64, scratch_operands = 0 : i64, tpu.core_type = #tpu.core_type<tc>, window_params = [{transform_indices = @transform_0, window_bounds = array<i64: 2, 8, 32>}, {pipeline_mode = #tpu.pipeline_mode<synchronous>, transform_indices = @transform_1, window_bounds = array<i64: 1, 32>}, {pipeline_mode = #tpu.pipeline_mode<synchronous>, transform_indices = @transform_2, window_bounds = array<i64: 1, 8>}, {transform_indices = @transform_3, window_bounds = array<i64: 2, 32>}]} {
    %c0 = arith.constant 0 : index
    %c0_0 = arith.constant 0 : index
    %c0_1 = arith.constant 0 : index
    %0 = vector.load %arg1[%c0, %c0_0, %c0_1] : memref<2x8x32xf32, #tpu.memory_space<vmem>>, vector<2x8x32xf32>
    %c0_2 = arith.constant 0 : index
    %c0_3 = arith.constant 0 : index
    %1 = vector.load %arg2[%c0_2, %c0_3] : memref<1x32xf32, #tpu.memory_space<vmem>>, vector<1x32xf32>
    %2 = vector.shape_cast %1 : vector<1x32xf32> to vector<1x1x32xf32>
    %3 = vector.broadcast %2 : vector<1x1x32xf32> to vector<2x8x32xf32>
    %4 = arith.mulf %0, %3 : vector<2x8x32xf32>
    %cst = arith.constant dense<0.000000e+00> : vector<2x8xf32>
    %5 = vector.multi_reduction <add>, %4, %cst [2] : vector<2x8x32xf32> to vector<2x8xf32>
    %c0_4 = arith.constant 0 : index
    %c0_5 = arith.constant 0 : index
    %6 = vector.load %arg3[%c0_4, %c0_5] : memref<1x8xf32, #tpu.memory_space<vmem>>, vector<1x8xf32>
    %7 = vector.broadcast %6 : vector<1x8xf32> to vector<2x8xf32>
    %8 = arith.addf %5, %7 : vector<2x8xf32>
    %9 = math.tanh %8 : vector<2x8xf32>
    %10 = math.exp %9 : vector<2x8xf32>
    %cst_6 = arith.constant dense<0.000000e+00> : vector<2xf32>
    %11 = vector.multi_reduction <add>, %10, %cst_6 [1] : vector<2x8xf32> to vector<2xf32>
    %12 = vector.shape_cast %11 : vector<2xf32> to vector<2x1xf32>
    %13 = tpu.reciprocal %12 : vector<2x1xf32> -> vector<2x1xf32>
    %14 = vector.broadcast %13 : vector<2x1xf32> to vector<2x8xf32>
    %15 = arith.mulf %10, %14 : vector<2x8xf32>
    %cst_7 = arith.constant 1.000000e-10 : f32
    %16 = vector.broadcast %cst_7 : f32 to vector<2x8xf32>
    %17 = arith.addf %15, %16 : vector<2x8xf32>
    %18 = vector.shape_cast %17 : vector<2x8xf32> to vector<2x8x1xf32>
    %19 = vector.broadcast %18 : vector<2x8x1xf32> to vector<2x8x32xf32>
    %20 = arith.mulf %0, %19 : vector<2x8x32xf32>
    %cst_8 = arith.constant dense<0.000000e+00> : vector<2x32xf32>
    %21 = vector.multi_reduction <add>, %20, %cst_8 [1] : vector<2x8x32xf32> to vector<2x32xf32>
    %c0_9 = arith.constant 0 : index
    %c0_10 = arith.constant 0 : index
    %22 = vector.load %arg4[%c0_9, %c0_10] : memref<2x32xf32, #tpu.memory_space<vmem>>, vector<2x32xf32>
    tpu.vector_store %arg4[%c0_9, %c0_10], %21 {strides = array<i32>} : memref<2x32xf32, #tpu.memory_space<vmem>>, vector<2x32xf32>,
    return
  }
  func.func @transform_0(%arg0: i32) -> (i32, i32, i32) {
    %c0_i32 = arith.constant 0 : i32
    %c0_i32_0 = arith.constant 0 : i32
    %c0_i32_1 = arith.constant 0 : i32
    return %arg0, %c0_i32, %c0_i32_0 : i32, i32, i32
  }
  func.func @transform_1(%arg0: i32) -> (i32, i32) {
    %c0_i32 = arith.constant 0 : i32
    %c0_i32_0 = arith.constant 0 : i32
    %c0_i32_1 = arith.constant 0 : i32
    return %c0_i32, %c0_i32_0 : i32, i32
  }
  func.func @transform_2(%arg0: i32) -> (i32, i32) {
    %c0_i32 = arith.constant 0 : i32
    %c0_i32_0 = arith.constant 0 : i32
    %c0_i32_1 = arith.constant 0 : i32
    return %c0_i32, %c0_i32_0 : i32, i32
  }
  func.func @transform_3(%arg0: i32) -> (i32, i32) {
    %c0_i32 = arith.constant 0 : i32
    %c0_i32_0 = arith.constant 0 : i32
    return %arg0, %c0_i32 : i32, i32
  }
}

</mosaic_0001>

<bundles_post_ra>
// kernel: tpu_custom_call.1
= control target key start
LH: loop header
LB: loop body
LE: loop exit
PB: predicated region body
PF: predicated region fallthrough
CT: control target
= control target key end

     0   :  { %8 = vsyncpa [#allocation3], 0  ;;  %s322_s0 = inlined_call_operand.hbm [shape: f32[2,8,32], index: 0, kind: input, shape index: {}]   ;;  %s323_s1 = inlined_call_operand.hbm [shape: f32[1,32], index: 1, kind: input, shape index: {}]   ;;  %s324_s2 = inlined_call_operand.vmem [shape: f32[1,8], index: 2, kind: input, shape index: {}]   ;;  %s325_s3 = inlined_call_operand.hbm [shape: f32[2,32], index: 3, kind: output, shape index: {}]  }
   0x1   :  { %9 = vsyncpa [#allocation6], 0 }
   0x2   :  { %10 = vsyncpa [#allocation4], 0  ;;  %s15_s14 = sshll.u32 %s322_s0, 4  ;;  %s270_s15 = smov [#allocation2]   ;;  %s16_s14 = int_to_ptr.hbm [resolvable:$true] %s15_s14 }
   0x3   :  { %s17_s16 = sshll.u32 %s270_s15, 4  ;;  %s29_s19 = sshll.u32 %s323_s1, 4  ;;  %s18_s16 = int_to_ptr.vmem [resolvable:$true] %s17_s16  ;;  %s30_s19 = int_to_ptr.hbm [resolvable:$true] %s29_s19 }
   0x4   :  { %s271_s20 = smov 128   ;;  %s272_s21 = smov 8  }
   0x5   :  { %23 = dma.hbm_to_vmem [thread:$0]  %s16_s14, 256, %s18_s16, [#allocation3], %s271_s20, %s271_s20, %s272_s21  }
   0x6   :  { %s273_s22 = smov [#allocation5]  }
   0x7   :  { %s31_s23 = sshll.u32 %s273_s22, 4  ;;  %s32_s23 = int_to_ptr.vmem [resolvable:$true] %s31_s23 }
   0x8   :  { %34 = dma.hbm_to_vmem [thread:$0]  %s30_s19, 16, %s32_s23, [#allocation6]  }
   0x9   :  { %264 = dma.done.wait [#allocation3], 256  }
   0xa   :  { %265 = vsyncadd [#allocation3], 4294967040 }
   0xb   :  { %266 = dma.done.wait [#allocation6], 16  }
   0xc   :  { %267 = vsyncadd [#allocation6], 4294967280  ;;  %v63_v0 = vlaneseq  ;;  %v302_v2 = vld [vmem:[#allocation2] sm:$0xff]  ;;  %v180_v3 = vld [vmem:[#allocation5] ss:$0 sm:$0xff]  ;;  %vm53_vm0 = vcmask 261120  }
   0xd   :  { %v181_v4 = vld [vmem:[%s324_s2] ss:$0 sm:$0xff]  ;;  %v51_v5 = vmul.f32 %v180_v3, %v302_v2  ;;  %v308_v6 = vld [vmem:[#allocation2 + $0x8] sm:$0xff]  ;;  %v274_v10 = vmov 0   ;;  %vm90_vm1 = vcmask 1041409   ;;  %vm93_vm2 = vcmask 58368  }
   0xe   :  { %v64_v1 = vshrl.u32 %v63_v0, 7  ;;  %v52_v8 = vmul.f32 %v180_v3, %v308_v6  ;;  %178 = vset.pattern.permute.xlu2 %v274_v10  ;;  %179 = vset.pattern.permute.xlu0 %v274_v10  ;;  %v87_v22 = vand.u32 127, %v63_v0  ;;  %s275_s2 = smov [#allocation7]   ;;  %s159_s27 = sshll.u32 %s325_s3, 4  ;;  %vm150_vm7 = vcmask 254976   ;;  %s160_s27 = int_to_ptr.hbm [resolvable:$true] %s159_s27 }
   0xf   :  { %v54_v7 = vsel %vm53_vm0, %v51_v5, 0.0  ;;  %s157_s24 = sshll.u32 %s275_s2, 4  ;;  %s158_s24 = int_to_ptr.vmem [resolvable:$true] %s157_s24 }
  0x10   :  { %176 = vset.pattern.permute.xlu1 %v64_v1  ;;  %55 = vadd.xlane.f32.xlu0 %v54_v7  ;;  %v57_v9 = vsel %vm53_vm0, %v52_v8, 0.0 }
  0x18   :  { %67 = vperm.xlu1 %176, %v181_v4   ;;  %58 = vadd.xlane.f32.xlu0 %v57_v9 }
  0x20   :  { %177 = vset.pattern.permute.xlu1 %v274_v10 }
  0x83   :  { %v56_v12 = vpop.xlane.xlu0 %55 }
  0x8a   :  { %v68_v11 = vpop.permute.xlu1 %67 }
  0x8b   :  { %v70_v13 = vadd.f32 %v68_v11, %v56_v12  ;;  %v59_v14 = vpop.xlane.xlu0 %58 }
  0x8c   :  { %v71_v16 = vadd.f32 %v68_v11, %v59_v14 }
  0x8d   :  { %182 = vtanh.f32 %v70_v13 }
  0x8e   :  { %184 = vtanh.f32 %v71_v16 }
  0x93   :  { %v183_v15 = vpop.eup %182 }
  0x94   :  { %v74_v17 = vmul.f32 1.442695, %v183_v15  ;;  %v185_v18 = vpop.eup %184 }
  0x95   :  { %v76_v20 = vmul.f32 1.442695, %v185_v18 }
  0x96   :  { %186 = vpow2.f32 %v74_v17 }
  0x97   :  { %188 = vpow2.f32 %v76_v20 }
  0x9c   :  { %v187_v19 = vpop.eup %186 }
  0x9d   :  { %81 = vperm.xlu1 %177, %v187_v19   ;;  %v189_v21 = vpop.eup %188 }
  0x9e   :  { %84 = vperm.xlu2 %178, %v189_v21  }
  0xf8   :  { %v85_v23 = vpop.permute.xlu2 %84 }
  0xf9   :  { %v89_v25 = vperm.slane %v85_v23, %v87_v22 }
 0x10f   :  { %v82_v24 = vpop.permute.xlu1 %81 }
 0x110   :  { %v88_v26 = vperm.slane %v82_v24, %v87_v22 }
 0x112   :  { %v91_v27 = vsel %vm90_vm1, %v89_v25, %v88_v26 }
 0x113   :  { %v94_v28 = vsel %vm93_vm2, %v91_v27, 0.0 }
 0x114   :  { %95 = vadd.xlane.f32.xlu2 %v94_v28 }
 0x187   :  { %v96_v29 = vpop.xlane.xlu2 %95 }
 0x188   :  { %190 = vrcp.f32 %v96_v29  ;;  %v108_v33 = vand.u32 2147483648, %v96_v29  ;;  %v106_v35 = vand.u32 2147483647, %v96_v29  ;;  %vm102_vm4 = vweird.f32 %v96_v29 }
 0x18a   :  { %v109_v37 = vor.u32 1.1754944e-38, %v108_v33  ;;  %vm107_vm6 = vcmp.eq.f32.partialorder %v106_v35, 8.507059e+37 }
 0x18e   :  { %v191_v30 = vpop.eup %190 }
 0x18f   :  { %v98_v31 = vmul.f32 %v191_v30, %v96_v29  ;;  %vm103_vm3 = vweird.f32 %v191_v30 }
 0x190   :  { %vm104_vm5 = vmor %vm102_vm4, %vm103_vm3 }
 0x191   :  { %v99_v32 = vsub.f32 1.0, %v98_v31 }
 0x193   :  { %v100_v34 = vmul.f32 %v191_v30, %v99_v32 }
 0x195   :  { %v101_v36 = vadd.f32 %v191_v30, %v100_v34 }
 0x197   :  { %v105_v38 = vsel %vm104_vm5, %v191_v30, %v101_v36 }
 0x198   :  { %v110_v39 = vsel %vm107_vm6, %v109_v37, %v105_v38 }
 0x199   :  { %v113_v40 = vperm.slane %v110_v39, 1  ;;  %v112_v41 = vperm.slane %v110_v39, 0 }
 0x19b   :  { %v117_v42 = vmul.f32 %v189_v21, %v113_v40  ;;  %v116_v43 = vmul.f32 %v187_v19, %v112_v41 }
 0x19d   :  { %v119_v44 = vadd.f32 1e-10, %v117_v42  ;;  %v118_v45 = vadd.f32 1e-10, %v116_v43 }
 0x19f   :  { %127 = vperm.xlu1 %177, %v119_v44   ;;  %122 = vperm.xlu0 %179, %v118_v45  }
 0x211   :  { %v128_v46 = vpop.permute.xlu1 %127  ;;  %v123_v47 = vpop.permute.xlu0 %122 }
 0x212   :  { %v131_v48 = vmul.f32 %v128_v46, %v308_v6  ;;  %v130_v49 = vmul.f32 %v123_v47, %v302_v2 }
 0x214   :  { %v139_v50 = vsel %vm53_vm0, %v131_v48, 0.0  ;;  %v132_v51 = vsel %vm53_vm0, %v130_v49, 0.0 }
 0x215   :  { %v140_v52 = vrot.slane %v139_v50, 4  ;;  %v133_v53 = vrot.slane %v132_v51, 4 }
 0x217   :  { %v141_v54 = vadd.f32 %v140_v52, %v139_v50  ;;  %v134_v55 = vadd.f32 %v133_v53, %v132_v51 }
 0x219   :  { %v142_v56 = vrot.slane %v141_v54, 2  ;;  %v135_v57 = vrot.slane %v134_v55, 2 }
 0x21b   :  { %v143_v58 = vadd.f32 %v142_v56, %v141_v54  ;;  %v136_v59 = vadd.f32 %v135_v57, %v134_v55 }
 0x21d   :  { %v144_v60 = vrot.slane %v143_v58, 1  ;;  %v137_v61 = vrot.slane %v136_v59, 1 }
 0x21f   :  { %v145_v62 = vadd.f32 %v144_v60, %v143_v58  ;;  %v138_v63 = vadd.f32 %v137_v61, %v136_v59 }
 0x221   :  { %v148_v0 = vsel %vm90_vm1, %v145_v62, %v138_v63 }
 0x222   :  { %151 = vst.msk [vmem:[#allocation7] sm:$0x3] %vm150_vm7, %v148_v0 }
 0x223   :  { %162 = dma.vmem_to_hbm [thread:$0]  %s158_s24, 32, %s160_s27, [#allocation4]  }
 0x224   :  { %268 = dma.done.wait [#allocation4], 32  }
 0x225   :  { %269 = vsyncadd [#allocation4], 4294967264 }
 0x226   :  { %167 = vsyncpa [#allocation3], 1 }
 0x227   :  { %168 = vsyncpa [#allocation6], 1 }
 0x228   :  { %169 = vsyncpa [#allocation4], 1 }

</bundles_post_ra>
